<compile_context>
chip_gen: v6e
topology: v6e:2x2x1
jax: 0.10.0
libtpu: 0.0.40
codegen_flags: <defaults>
</compile_context>

<pallas_src>
from functools import partial

import jax
import jax.numpy as jnp
import numpy as np
from jax import lax
from jax.experimental import pallas as pl
from jax.experimental.pallas import tpu as pltpu


# --------------------------------------------------------------------------- #
# helpers
# --------------------------------------------------------------------------- #
def _round_up(x, m):
    return ((x + m - 1) // m) * m


_VMEM_LIMIT = 48 * 1024 * 1024   # > v5e/v6e scoped defaults, < v7x 64 MiB physical


# --------------------------------------------------------------------------- #
# Tiled linear (matmul + bias) kernel with K-axis accumulation
# --------------------------------------------------------------------------- #
def _linear_kernel(x_ref, w_ref, b_ref, o_ref, acc_ref):
    kk = pl.program_id(2)

    @pl.when(kk == 0)
    def _():
        acc_ref[...] = jnp.zeros_like(acc_ref)

    acc_ref[...] += jnp.dot(x_ref[...], w_ref[...],
                            preferred_element_type=jnp.float32)

    @pl.when(kk == pl.num_programs(2) - 1)
    def _():
        o_ref[...] = (acc_ref[...] + b_ref[...].astype(jnp.float32)).astype(o_ref.dtype)


def pallas_linear(x, w, b, *, tm_pref=256, tn_pref=512, tk_pref=512):
    """x: (M, K), w: (K, N), b: (1, N) -> (M, N) in x.dtype (ragged dims padded)."""
    M, K = x.shape
    N = w.shape[1]
    tm = min(tm_pref, _round_up(M, 8))
    tn = min(tn_pref, _round_up(N, 128))
    tk = min(tk_pref, _round_up(K, 128))
    Mp, Np, Kp = _round_up(M, tm), _round_up(N, tn), _round_up(K, tk)

    xp = x if (Mp == M and Kp == K) else jnp.pad(x, ((0, Mp - M), (0, Kp - K)))
    wp = w if (Kp == K and Np == N) else jnp.pad(w, ((0, Kp - K), (0, Np - N)))
    bp = b if Np == N else jnp.pad(b, ((0, 0), (0, Np - N)))

    grid = (Mp // tm, Np // tn, Kp // tk)
    out = pl.pallas_call(
        _linear_kernel,
        grid=grid,
        out_shape=jax.ShapeDtypeStruct((Mp, Np), x.dtype),
        in_specs=[
            pl.BlockSpec((tm, tk), lambda i, j, kk: (i, kk)),
            pl.BlockSpec((tk, tn), lambda i, j, kk: (kk, j)),
            pl.BlockSpec((1, tn), lambda i, j, kk: (0, j)),
        ],
        out_specs=pl.BlockSpec((tm, tn), lambda i, j, kk: (i, j)),
        scratch_shapes=[pltpu.VMEM((tm, tn), jnp.float32)],
        compiler_params=pltpu.CompilerParams(
            dimension_semantics=("parallel", "parallel", "arbitrary"),
            vmem_limit_bytes=_VMEM_LIMIT),
    )(xp, wp, bp)
    return out if (Mp == M and Np == N) else out[:M, :N]


# --------------------------------------------------------------------------- #
# Flash-style block-diagonal varlen attention
#   grid = (batch, q_tiles, kv_steps); kv axis is the reduction ("arbitrary").
#   Scalar-prefetched (kv_lo, kv_hi) per q tile restrict the kv steps to the
#   segments actually attended by that tile; fully-out-of-range steps are
#   skipped (and their DMAs collapse onto the previous block index).
#   q/k/v/out are in lane-dense (b, s, H*D) layout; heads are looped in-kernel.
# --------------------------------------------------------------------------- #
def _attn_kernel(kv_lo_ref, kv_hi_ref,            # scalar-prefetch (SMEM)
                 q_ref, k_ref, v_ref, qs_ref, qe_ref,
                 o_ref,
                 m_sc, l_sc, acc_sc,
                 *, num_heads, head_dim):
    qi = pl.program_id(1)
    ki = pl.program_id(2)
    tq = q_ref.shape[1]
    tk = k_ref.shape[1]

    @pl.when(ki == 0)
    def _():
        m_sc[...] = jnp.full(m_sc.shape, -1e30, dtype=jnp.float32)
        l_sc[...] = jnp.zeros(l_sc.shape, dtype=jnp.float32)
        acc_sc[...] = jnp.zeros(acc_sc.shape, dtype=jnp.float32)

    blk = kv_lo_ref[qi] + ki                       # actual kv block for this step

    @pl.when(blk <= kv_hi_ref[qi])
    def _():
        # varlen mask from absolute kv column positions vs. per-row [start, end)
        col = blk * tk + lax.broadcasted_iota(jnp.int32, (tq, tk), 1)
        mask = (col >= qs_ref[...]) & (col < qe_ref[...])          # (tq, tk)

        for h in range(num_heads):                  # static unrolled head loop
            lo, hi = h * head_dim, (h + 1) * head_dim
            qh = q_ref[0, :, lo:hi]                 # (tq, d)  (RoPE + scale pre-applied)
            kh = k_ref[0, :, lo:hi]                 # (tk, d)

            s = lax.dot_general(qh, kh, (((1,), (1,)), ((), ())),
                                preferred_element_type=jnp.float32)  # (tq, tk)
            s = jnp.where(mask, s, -1e30)

            m_prev = m_sc[h]
            m_new = jnp.maximum(m_prev, jnp.max(s, axis=-1, keepdims=True))
            alpha = jnp.exp(m_prev - m_new)
            p = jnp.where(mask, jnp.exp(s - m_new), 0.0)
            l_sc[h] = alpha * l_sc[h] + jnp.sum(p, axis=-1, keepdims=True)
            acc_sc[h] = alpha * acc_sc[h] + jnp.dot(
                p.astype(v_ref.dtype), v_ref[0, :, lo:hi],
                preferred_element_type=jnp.float32)
            m_sc[h] = m_new

    @pl.when(ki == pl.num_programs(2) - 1)
    def _():
        for h in range(num_heads):
            lo, hi = h * head_dim, (h + 1) * head_dim
            l = l_sc[h]
            l = jnp.where(l == 0.0, 1.0, l)          # fully-masked padded rows -> 0
            # exact reciprocal only to hold the tight validation tolerance;
            # pl.reciprocal(..., approx=True) is a free EUP micro-opt otherwise.
            o_ref[0, :, lo:hi] = (acc_sc[h] * pl.reciprocal(l, approx=False)
                                  ).astype(o_ref.dtype)


def pallas_varlen_attention(q, k, v, q_start, q_end, kv_lo, kv_hi, n_kv_steps,
                            *, num_heads, head_dim, tq, tk):
    """q, k, v: (b, s_pad, H*D) -> (b, s_pad, H*D) block-diagonal varlen attention."""
    b, s_pad, hd = q.shape
    n_q = s_pad // tq
    grid = (b, n_q, n_kv_steps)

    def q_map(bi, qi, ki, lo, hi):
        return (bi, qi, 0)

    def kv_map(bi, qi, ki, lo, hi):
        # clamp to this q tile's last in-segment block so trailing (skipped)
        # steps reuse the already-resident block (no extra DMA, no OOB).
        return (bi, jnp.minimum(lo[qi] + ki, hi[qi]), 0)

    def seg_map(bi, qi, ki, lo, hi):
        return (qi, 0)

    kern = partial(_attn_kernel, num_heads=num_heads, head_dim=head_dim)
    return pl.pallas_call(
        kern,
        grid_spec=pltpu.PrefetchScalarGridSpec(
            num_scalar_prefetch=2,
            grid=grid,
            in_specs=[
                pl.BlockSpec((1, tq, hd), q_map),
                pl.BlockSpec((1, tk, hd), kv_map),
                pl.BlockSpec((1, tk, hd), kv_map),
                pl.BlockSpec((tq, 1), seg_map),      # per-row segment start
                pl.BlockSpec((tq, 1), seg_map),      # per-row segment end
            ],
            out_specs=pl.BlockSpec((1, tq, hd), q_map),
            scratch_shapes=[
                pltpu.VMEM((num_heads, tq, 1), jnp.float32),          # running max
                pltpu.VMEM((num_heads, tq, 1), jnp.float32),          # running denom
                pltpu.VMEM((num_heads, tq, head_dim), jnp.float32),   # accumulator
            ],
        ),
        out_shape=jax.ShapeDtypeStruct((b, s_pad, hd), q.dtype),
        compiler_params=pltpu.CompilerParams(
            dimension_semantics=("parallel", "parallel", "arbitrary"),
            vmem_limit_bytes=_VMEM_LIMIT),
    )(kv_lo, kv_hi, q, k, v, q_start, q_end)


# --------------------------------------------------------------------------- #
# Full module forward
# --------------------------------------------------------------------------- #
def qwen2_vision_attention(x, cu_seqlens, rotary_pos_emb, params, num_heads):
    """x: (s, b, embed).  Returns (s, b, embed)."""
    s, b, embed = x.shape
    w_qkv, b_qkv, w_proj, b_proj = params
    proj_size = w_qkv.shape[1] // 3
    head_dim = proj_size // num_heads
    hd = proj_size                                  # num_heads * head_dim

    # ---- qkv projection (tiled Pallas matmul + bias) ----
    qkv = pallas_linear(x.reshape(s * b, embed), w_qkv, b_qkv)        # (s*b, 3*hd)
    qkv = qkv.reshape(s, b, num_heads, 3 * head_dim)
    q, k, v = jnp.split(qkv, 3, axis=-1)                              # (s, b, h, d)

    # ---- RoPE hoisted out of the attention loop (once per token, f32),
    #      softmax 1/sqrt(d) folded into q ----
    cos = jnp.cos(rotary_pos_emb).astype(jnp.float32)                 # (s, d/2)
    sin = jnp.sin(rotary_pos_emb).astype(jnp.float32)
    cos_f = jnp.concatenate([cos, cos], axis=-1)[:, None, None, :]    # (s,1,1,d)
    sin_f = jnp.concatenate([sin, sin], axis=-1)[:, None, None, :]

    def rope(t):
        t = t.astype(jnp.float32)
        t1, t2 = jnp.split(t, 2, axis=-1)
        return t * cos_f + jnp.concatenate([-t2, t1], axis=-1) * sin_f

    scale = 1.0 / float(np.sqrt(head_dim))
    q = (rope(q) * scale).astype(x.dtype)
    k = rope(k).astype(x.dtype)

    # 's b h d' -> 'b s (h d)' lane-dense attention layout (heads looped in-kernel).
    # TODO(synk): fuse this transpose + the RoPE above into a Pallas pre-kernel to
    # save one HBM round trip of q/k at production shapes.
    q = jnp.transpose(q, (1, 0, 2, 3)).reshape(b, s, hd)
    k = jnp.transpose(k, (1, 0, 2, 3)).reshape(b, s, hd)
    v = jnp.transpose(v, (1, 0, 2, 3)).reshape(b, s, hd)

    # ---- tiling / padding (fixed MXU-friendly tiles, ragged tail masked) ----
    s8 = _round_up(s, 8)
    if s8 >= 512:
        tq, tk = 256, 512
    else:
        tq = tk = s8
    s_pad = _round_up(s, max(tq, tk))
    if s_pad != s:
        pad = ((0, 0), (0, s_pad - s), (0, 0))
        q, k, v = (jnp.pad(t, pad) for t in (q, k, v))

    # ---- varlen metadata from cu_seqlens ----
    cu = cu_seqlens.astype(jnp.int32)
    pos = jnp.arange(s_pad, dtype=jnp.int32)
    seg = jnp.searchsorted(cu[1:], jnp.minimum(pos, s - 1), side="right")
    q_start = jnp.where(pos < s, cu[seg], s_pad).astype(jnp.int32).reshape(s_pad, 1)
    q_end = jnp.where(pos < s, cu[seg + 1], s_pad).astype(jnp.int32).reshape(s_pad, 1)

    n_q = s_pad // tq
    tile_first = jnp.arange(n_q, dtype=jnp.int32) * tq
    first_real = jnp.minimum(tile_first, s - 1)
    last_real = jnp.minimum(tile_first + (tq - 1), s - 1)
    seg_f = jnp.searchsorted(cu[1:], first_real, side="right")
    seg_l = jnp.searchsorted(cu[1:], last_real, side="right")
    kv_lo = cu[seg_f] // tk
    kv_hi = (cu[seg_l + 1] - 1) // tk
    all_pad = tile_first >= s
    kv_lo = jnp.where(all_pad, 0, kv_lo).astype(jnp.int32)
    kv_hi = jnp.where(all_pad, 0, kv_hi).astype(jnp.int32)

    # Static kv-step bound (mirrors the host-side .max().item() in the torch module).
    # TODO(synk): under jit, pass max_seqlen statically instead of reading device values.
    kv_lo_h = np.asarray(jax.device_get(kv_lo))
    kv_hi_h = np.asarray(jax.device_get(kv_hi))
    n_kv_steps = int(np.max(kv_hi_h - kv_lo_h)) + 1

    ctx = pallas_varlen_attention(q, k, v, q_start, q_end, kv_lo, kv_hi, n_kv_steps,
                                  num_heads=num_heads, head_dim=head_dim,
                                  tq=tq, tk=tk)                      # (b, s_pad, hd)
    ctx = ctx[:, :s]

    # 'b s (h d)' -> 's b (h d)' (free when b == 1, the typical vision case)
    ctx = jnp.transpose(ctx, (1, 0, 2)).reshape(s * b, hd)

    # ---- output projection ----
    out = pallas_linear(ctx, w_proj, b_proj)
    return out.reshape(s, b, embed)


# --------------------------------------------------------------------------- #
# Pure-JAX reference (mirrors the PyTorch SDPA path) for validation
# --------------------------------------------------------------------------- #
def ref_forward(x, cu_seqlens, rotary_pos_emb, params, num_heads):
    s, b, embed = x.shape
    w_qkv, b_qkv, w_proj, b_proj = params
    proj_size = w_qkv.shape[1] // 3
    head_dim = proj_size // num_heads

    qkv = x.reshape(s * b, embed) @ w_qkv + b_qkv[0]
    qkv = qkv.reshape(s, b, num_heads, 3 * head_dim)
    q, k, v = jnp.split(qkv, 3, axis=-1)
    q, k, v = (jnp.transpose(t, (1, 2, 0, 3)).astype(jnp.float32) for t in (q, k, v))

    cos = jnp.cos(rotary_pos_emb).astype(jnp.float32)
    sin = jnp.sin(rotary_pos_emb).astype(jnp.float32)
    cos_f = jnp.concatenate([cos, cos], -1)[None, None]
    sin_f = jnp.concatenate([sin, sin], -1)[None, None]

    def rope(t):
        t1, t2 = jnp.split(t, 2, axis=-1)
        rot = jnp.concatenate([-t2, t1], axis=-1)
        return t * cos_f + rot * sin_f

    q, k = rope(q), rope(k)

    pos = jnp.arange(s)
    seg = jnp.searchsorted(cu_seqlens[1:], pos, side="right")
    allowed = seg[:, None] == seg[None, :]

    scores = jnp.einsum("bhsd,bhtd->bhst", q, k) / np.sqrt(head_dim)
    scores = jnp.where(allowed[None, None], scores, -1e30)
    p = jax.nn.softmax(scores, axis=-1)
    ctx = jnp.einsum("bhst,bhtd->bhsd", p, v)
    ctx = jnp.transpose(ctx, (2, 0, 1, 3)).reshape(s, b, proj_size).astype(x.dtype)
    out = ctx.reshape(s * b, proj_size) @ w_proj + b_proj[0]
    return out.reshape(s, b, embed)


if __name__ == "__main__":
    # small, module-consistent shapes
    seq, batch, embed_dim = 8, 2, 32
    num_heads, projection_size = 2, 32
    head_dim = projection_size // num_heads  # 16

    key = jax.random.PRNGKey(0)
    k1, k2, k3, k4, k5, k6 = jax.random.split(key, 6)

    x = jax.random.normal(k1, (seq, batch, embed_dim), dtype=jnp.float32)
    rotary_pos_emb = jax.random.normal(k2, (seq, head_dim // 2), dtype=jnp.float32)
    cu_seqlens = jnp.array([0, 4, 8], dtype=jnp.int32)

    # weights stored as (in, out), biases as (1, out)
    w_qkv = 0.02 * jax.random.normal(k3, (embed_dim, 3 * projection_size), jnp.float32)
    b_qkv = 0.02 * jax.random.normal(k4, (1, 3 * projection_size), jnp.float32)
    w_proj = 0.02 * jax.random.normal(k5, (projection_size, embed_dim), jnp.float32)
    b_proj = 0.02 * jax.random.normal(k6, (1, embed_dim), jnp.float32)
    params = (w_qkv, b_qkv, w_proj, b_proj)

    out = qwen2_vision_attention(x, cu_seqlens, rotary_pos_emb, params, num_heads)
    out = jax.block_until_ready(out)

    ref = ref_forward(x, cu_seqlens, rotary_pos_emb, params, num_heads)
    np.testing.assert_allclose(np.asarray(out), np.asarray(ref), rtol=1e-4, atol=1e-4)

    print("KERNEL_OK")
</pallas_src>

<mosaic_0001>
module attributes {stable_mosaic.version = 11 : i64} {
  func.func @_linear_kernel(%arg0: i32, %arg1: i32, %arg2: i32, %arg3: memref<16x128xf32, #tpu.memory_space<vmem>>, %arg4: memref<128x128xf32, #tpu.memory_space<vmem>>, %arg5: memref<1x128xf32, #tpu.memory_space<vmem>>, %arg6: memref<16x128xf32, #tpu.memory_space<vmem>>, %arg7: memref<16x128xf32, #tpu.memory_space<vmem>>) attributes {dimension_semantics = [#tpu.dimension_semantics<parallel>, #tpu.dimension_semantics<parallel>, #tpu.dimension_semantics<arbitrary>], iteration_bounds = array<i64: 1, 1, 1>, scalar_prefetch = 0 : i64, scratch_operands = 1 : i64, tpu.core_type = #tpu.core_type<tc>, window_params = [{transform_indices = @transform_0, window_bounds = array<i64: 16, 128>}, {transform_indices = @transform_1, window_bounds = array<i64: 128, 128>}, {transform_indices = @transform_2, window_bounds = array<i64: 1, 128>}, {transform_indices = @transform_3, window_bounds = array<i64: 16, 128>}]} {
    %c0_i32 = arith.constant 0 : i32
    %0 = arith.cmpi eq, %arg2, %c0_i32 : i32
    %1 = arith.extui %0 : i1 to i32
    %c0_i32_0 = arith.constant 0 : i32
    %2 = arith.cmpi ne, %1, %c0_i32_0 : i32
    scf.if %2 {
      %cst_10 = arith.constant 0.000000e+00 : f32
      %12 = vector.broadcast %cst_10 : f32 to vector<16x128xf32>
      %c0_11 = arith.constant 0 : index
      %c0_12 = arith.constant 0 : index
      %13 = vector.load %arg7[%c0_11, %c0_12] : memref<16x128xf32, #tpu.memory_space<vmem>>, vector<16x128xf32>
      tpu.vector_store %arg7[%c0_11, %c0_12], %12 {strides = array<i32>} : memref<16x128xf32, #tpu.memory_space<vmem>>, vector<16x128xf32>,
    } else {
    }
    %c0 = arith.constant 0 : index
    %c0_1 = arith.constant 0 : index
    %3 = vector.load %arg7[%c0, %c0_1] : memref<16x128xf32, #tpu.memory_space<vmem>>, vector<16x128xf32>
    %c0_2 = arith.constant 0 : index
    %c0_3 = arith.constant 0 : index
    %4 = vector.load %arg3[%c0_2, %c0_3] : memref<16x128xf32, #tpu.memory_space<vmem>>, vector<16x128xf32>
    %c0_4 = arith.constant 0 : index
    %c0_5 = arith.constant 0 : index
    %5 = vector.load %arg4[%c0_4, %c0_5] : memref<128x128xf32, #tpu.memory_space<vmem>>, vector<128x128xf32>
    %cst = arith.constant dense<0.000000e+00> : vector<16x128xf32>
    %6 = tpu.matmul %4, %5, %cst {dimension_numbers = #tpu.dot_dimension_numbers<[1], [0], [0], [1], [0, 0, 1, 1], [], []>} : vector<16x128xf32>, vector<128x128xf32>, vector<16x128xf32> -> vector<16x128xf32>
    %7 = arith.addf %3, %6 : vector<16x128xf32>
    %c0_6 = arith.constant 0 : index
    %c0_7 = arith.constant 0 : index
    %8 = vector.load %arg7[%c0_6, %c0_7] : memref<16x128xf32, #tpu.memory_space<vmem>>, vector<16x128xf32>
    tpu.vector_store %arg7[%c0_6, %c0_7], %7 {strides = array<i32>} : memref<16x128xf32, #tpu.memory_space<vmem>>, vector<16x128xf32>,
    %c0_i32_8 = arith.constant 0 : i32
    %9 = arith.cmpi eq, %arg2, %c0_i32_8 : i32
    %10 = arith.extui %9 : i1 to i32
    %c0_i32_9 = arith.constant 0 : i32
    %11 = arith.cmpi ne, %10, %c0_i32_9 : i32
    scf.if %11 {
      %c0_10 = arith.constant 0 : index
      %c0_11 = arith.constant 0 : index
      %12 = vector.load %arg7[%c0_10, %c0_11] : memref<16x128xf32, #tpu.memory_space<vmem>>, vector<16x128xf32>
      %c0_12 = arith.constant 0 : index
      %c0_13 = arith.constant 0 : index
      %13 = vector.load %arg5[%c0_12, %c0_13] : memref<1x128xf32, #tpu.memory_space<vmem>>, vector<1x128xf32>
      %14 = vector.broadcast %13 : vector<1x128xf32> to vector<16x128xf32>
      %15 = arith.addf %12, %14 : vector<16x128xf32>
      %c0_14 = arith.constant 0 : index
      %c0_15 = arith.constant 0 : index
      %16 = vector.load %arg6[%c0_14, %c0_15] : memref<16x128xf32, #tpu.memory_space<vmem>>, vector<16x128xf32>
      tpu.vector_store %arg6[%c0_14, %c0_15], %15 {strides = array<i32>} : memref<16x128xf32, #tpu.memory_space<vmem>>, vector<16x128xf32>,
    } else {
    }
    return
  }
  func.func @transform_0(%arg0: i32, %arg1: i32, %arg2: i32) -> (i32, i32) {
    %c0_i32 = arith.constant 0 : i32
    return %arg0, %arg2 : i32, i32
  }
  func.func @transform_1(%arg0: i32, %arg1: i32, %arg2: i32) -> (i32, i32) {
    %c0_i32 = arith.constant 0 : i32
    return %arg2, %arg1 : i32, i32
  }
  func.func @transform_2(%arg0: i32, %arg1: i32, %arg2: i32) -> (i32, i32) {
    %c0_i32 = arith.constant 0 : i32
    %c0_i32_0 = arith.constant 0 : i32
    return %c0_i32, %arg1 : i32, i32
  }
  func.func @transform_3(%arg0: i32, %arg1: i32, %arg2: i32) -> (i32, i32) {
    %c0_i32 = arith.constant 0 : i32
    return %arg0, %arg1 : i32, i32
  }
}

</mosaic_0001>

<bundles_post_ra>
// kernel: tpu_custom_call.1
= control target key start
LH: loop header
LB: loop body
LE: loop exit
PB: predicated region body
PF: predicated region fallthrough
CT: control target
= control target key end

     0   :  { %8 = vsyncpa [#allocation4], 0  ;;  %s353_s0 = inlined_call_operand.hbm [shape: f32[16,128], index: 0, kind: input, shape index: {}]   ;;  %s354_s1 = inlined_call_operand.hbm [shape: f32[128,128], index: 1, kind: input, shape index: {}]   ;;  %s355_s2 = inlined_call_operand.vmem [shape: f32[1,128], index: 2, kind: input, shape index: {}]   ;;  %s356_s3 = inlined_call_operand.hbm [shape: f32[16,128], index: 3, kind: output, shape index: {}]  }
   0x1   :  { %9 = vsyncpa [#allocation7], 0 }
   0x2   :  { %10 = vsyncpa [#allocation5], 0  ;;  %s307_s12 = smov [#allocation3]  }
   0x3   :  { %s16_s13 = sshll.u32 %s307_s12, 4  ;;  %s17_s13 = int_to_ptr.vmem [resolvable:$true] %s16_s13 }
   0x4   :  { %s249_s14 = scalar_lea.vmem %s17_s13, 256  ;;  %p254_p1 = scmp.lt.s32.totalorder %s17_s13, %s17_s13 }
   0x5   :  { %p250_p0 = scmp.ne.s32.totalorder %s17_s13, %s249_s14  ;;  %p255_p2 = scmp.lt.s32.totalorder %s249_s14, %s249_s14 }
   0x7   :  { %p256_p3 = por %p255_p2, %p254_p1 }
   0x9   :  { %p257_p4 = pnand %p256_p3, %p250_p0 }
   0xb   :  { %260 = shalt.err (!%p257_p4)
}
   0xc   :  { %s308_s15 = smov 128   ;;  %s309_s16 = smov 8  }
   0xd   :  { %22 = dma.hbm_to_vmem [thread:$0]  %s353_s0, 256, %s17_s13, [#allocation4], %s308_s15, %s308_s15, %s309_s16  }
   0xe   :  { %s310_s19 = smov [#allocation6]  }
   0xf   :  { %s28_s20 = sshll.u32 %s310_s19, 4  ;;  %s29_s20 = int_to_ptr.vmem [resolvable:$true] %s28_s20 }
  0x10   :  { %s269_s21 = scalar_lea.vmem %s29_s20, 2048  ;;  %p274_p6 = scmp.lt.s32.totalorder %s29_s20, %s29_s20 }
  0x11   :  { %p270_p5 = scmp.ne.s32.totalorder %s29_s20, %s269_s21  ;;  %p275_p7 = scmp.lt.s32.totalorder %s269_s21, %s269_s21 }
  0x13   :  { %p276_p8 = por %p275_p7, %p274_p6 }
  0x15   :  { %p277_p9 = pnand %p276_p8, %p270_p5 }
  0x17   :  { %280 = shalt.err (!%p277_p9)
}
  0x18   :  { %34 = dma.hbm_to_vmem [thread:$0]  %s354_s1, 2048, %s29_s20, [#allocation7], %s308_s15, %s308_s15, %s309_s16  }
  0x19   :  { %301 = dma.done.wait [#allocation4], 256  }
  0x1a   :  { %302 = vsyncadd [#allocation4], 4294967040 }
  0x1b   :  { %303 = dma.done.wait [#allocation7], 2048  }
  0x1c   :  { %304 = vsyncadd [#allocation7], 4294965248  ;;  %v68_v0 = vld [vmem:[#allocation6 + $0x78] sm:$0xff]  ;;  %v67_v1 = vld [vmem:[#allocation6 + $0x70] sm:$0xff]  ;;  %s311_s24 = smov [#allocation8]  }
  0x1d   :  { %201 = vmatprep.subr.mxu0 %v68_v0  ;;  %v66_v2 = vld [vmem:[#allocation6 + $0x68] sm:$0xff]  ;;  %v65_v3 = vld [vmem:[#allocation6 + $0x60] sm:$0xff]  ;;  %v51_v4 = vld [vmem:[#allocation3] sm:$0xff]  ;;  %s169_s25 = sshll.u32 %s311_s24, 4  ;;  %s170_s25 = int_to_ptr.vmem [resolvable:$true] %s169_s25 }
  0x1e   :  { %202 = vmatpush3.msra.mxu0 %v68_v0  ;;  %v64_v5 = vld [vmem:[#allocation6 + $0x58] sm:$0xff]  ;;  %233 = vmatprep.mubr.f32.mxu0 %v51_v4  ;;  %v63_v6 = vld [vmem:[#allocation6 + $0x50] sm:$0xff]  ;;  %v62_v7 = vld [vmem:[#allocation6 + $0x48] sm:$0xff]  ;;  %s281_s26 = scalar_lea.vmem %s170_s25, 256  ;;  %p286_p11 = scmp.lt.s32.totalorder %s170_s25, %s170_s25 }
  0x1f   :  { %203 = vmatprep.subr.mxu0 %v67_v1  ;;  %v61_v8 = vld [vmem:[#allocation6 + $0x40] sm:$0xff]  ;;  %v60_v9 = vld [vmem:[#allocation6 + $0x38] sm:$0xff]  ;;  %v59_v10 = vld [vmem:[#allocation6 + $0x30] sm:$0xff]  ;;  %p282_p10 = scmp.ne.s32.totalorder %s170_s25, %s281_s26  ;;  %p287_p12 = scmp.lt.s32.totalorder %s281_s26, %s281_s26 }
  0x20   :  { %204 = vmatpush3.msra.mxu0 %v67_v1  ;;  %v58_v11 = vld [vmem:[#allocation6 + $0x28] sm:$0xff]  ;;  %v57_v12 = vld [vmem:[#allocation6 + $0x20] sm:$0xff]  ;;  %v56_v13 = vld [vmem:[#allocation6 + $0x18] sm:$0xff] }
  0x21   :  { %205 = vmatprep.subr.mxu0 %v66_v2  ;;  %v55_v14 = vld [vmem:[#allocation6 + $0x10] sm:$0xff]  ;;  %v54_v15 = vld [vmem:[#allocation6 + $0x8] sm:$0xff]  ;;  %v53_v16 = vld [vmem:[#allocation6] sm:$0xff]  ;;  %p288_p13 = por %p287_p12, %p286_p11 }
  0x22   :  { %206 = vmatpush3.msra.mxu0 %v66_v2  ;;  %v52_v17 = vld [vmem:[#allocation3 + $0x8] sm:$0xff]  ;;  %v182_v18 = vld [vmem:[%s355_s2] ss:$0 sm:$0xff] }
  0x23   :  { %207 = vmatprep.subr.mxu0 %v65_v3  ;;  %p289_p0 = pnand %p288_p13, %p282_p10 }
  0x24   :  { %208 = vmatpush3.msra.mxu0 %v65_v3 }
  0x25   :  { %209 = vmatprep.subr.mxu0 %v64_v5 }
  0x26   :  { %210 = vmatpush3.msra.mxu0 %v64_v5 }
  0x27   :  { %211 = vmatprep.subr.mxu0 %v63_v6 }
  0x28   :  { %212 = vmatpush3.msra.mxu0 %v63_v6 }
  0x29   :  { %213 = vmatprep.subr.mxu0 %v62_v7 }
  0x2a   :  { %214 = vmatpush3.msra.mxu0 %v62_v7 }
  0x2b   :  { %215 = vmatprep.subr.mxu0 %v61_v8 }
  0x2c   :  { %216 = vmatpush3.msra.mxu0 %v61_v8 }
  0x2d   :  { %217 = vmatprep.subr.mxu0 %v60_v9 }
  0x2e   :  { %218 = vmatpush3.msra.mxu0 %v60_v9 }
  0x2f   :  { %219 = vmatprep.subr.mxu0 %v59_v10 }
  0x30   :  { %220 = vmatpush3.msra.mxu0 %v59_v10 }
  0x31   :  { %221 = vmatprep.subr.mxu0 %v58_v11 }
  0x32   :  { %222 = vmatpush3.msra.mxu0 %v58_v11 }
  0x33   :  { %223 = vmatprep.subr.mxu0 %v57_v12 }
  0x34   :  { %224 = vmatpush3.msra.mxu0 %v57_v12 }
  0x35   :  { %225 = vmatprep.subr.mxu0 %v56_v13 }
  0x36   :  { %226 = vmatpush3.msra.mxu0 %v56_v13 }
  0x37   :  { %227 = vmatprep.subr.mxu0 %v55_v14 }
  0x38   :  { %228 = vmatpush3.msra.mxu0 %v55_v14 }
  0x39   :  { %229 = vmatprep.subr.mxu0 %v54_v15 }
  0x3a   :  { %230 = vmatpush3.msra.mxu0 %v54_v15 }
  0x3b   :  { %231 = vmatprep.subr.mxu0 %v53_v16 }
  0x3c   :  { %232 = vmatpush3.msra.mxu0 %v53_v16 }
  0x3d   :  { %234 = vmatmul.mubr.f32.vlgmr.msra.gmra.mxu0 %v52_v17 }
  0xfd   :  { %v235_v19 = vpop.f32.mrf.mxu0 }
  0xfe   :  { %v161_v20 = vadd.f32 %v235_v19, %v182_v18 }
  0xff   :  { %v135_v21 = vpop.f32.mrf.mxu0 }
 0x100   :  { %163 = vst [vmem:[#allocation8 + $0x8] sm:$0xff] %v161_v20  ;;  %v160_v22 = vadd.f32 %v182_v18, %v135_v21 }
 0x102   :  { %162 = vst [vmem:[#allocation8] sm:$0xff] %v160_v22 }
 0x103   :  { %292 = shalt.err (!%p289_p0)
}
 0x104   :  { %175 = dma.vmem_to_hbm [thread:$0]  %s170_s25, 256, %s356_s3, [#allocation5], %s308_s15, %s308_s15, %s309_s16  }
 0x105   :  { %305 = dma.done.wait [#allocation5], 256  }
 0x106   :  { %306 = vsyncadd [#allocation5], 4294967040 }
 0x107   :  { %179 = vsyncpa [#allocation4], 1 }
 0x108   :  { %180 = vsyncpa [#allocation7], 1 }
 0x109   :  { %181 = vsyncpa [#allocation5], 1 }

</bundles_post_ra>
